<compile_context>
chip_gen: v6e
topology: v6e:2x2x1
jax: 0.10.0
libtpu: 0.0.40
codegen_flags: <defaults>
</compile_context>

<pallas_src>
import jax
import jax.numpy as jnp
from jax.experimental import pallas as pl
from jax.experimental.pallas import tpu as pltpu


def _mlp_chain_kernel(x_ref, *refs):
    """refs = (w1, b1, ..., wN, bN, out_ref).  ReLU after every layer but the last."""
    out_ref = refs[-1]
    param_refs = refs[:-1]
    n_layers = len(param_refs) // 2

    h = x_ref[...].astype(jnp.float32)
    for l in range(n_layers):
        w = param_refs[2 * l][...]
        b = param_refs[2 * l + 1][...]
        h = jnp.dot(h, w, preferred_element_type=jnp.float32) + b
        if l != n_layers - 1:
            # ReLU; Dropout(0.1) between encoder layers is identity at inference.
            h = jnp.maximum(h, 0.0)
    out_ref[...] = h.astype(out_ref.dtype)


def _round_up(a, m):
    return ((a + m - 1) // m) * m


def _pack_block_diag(params, pack):
    """Replicate each (din, dout) weight into a (P*din, P*dout) block-diagonal
    matrix (kron(I_P, W)) and tile the bias P times.  A lane-dense (rows, 128)
    activation slab -- each 128-lane row holding P consecutive batch samples of
    D features -- multiplied by the packed weight stays lane-dense through the
    whole layer chain, so no in-kernel reshape/relayout is ever needed."""
    packed = []
    for w, b in params:
        eye = jnp.eye(pack, dtype=w.dtype)
        packed.append((jnp.kron(eye, w), jnp.tile(b, (1, pack))))
    return packed


def autoencoder_forward(x, params, *, max_batch_tile=512):
    """x: (B, D). params: list of 6 (W(in,out), b(1,out)) tuples (pre-transposed),
    ReLU between layers, identity on the last layer (PyTorch AutoEncoder, eval)."""
    B, D = x.shape
    itemsize = jnp.dtype(x.dtype).itemsize

    # ---- layout decision: lane-dense packing when D divides 128 ----
    pack = 128 // D if (D < 128 and 128 % D == 0) else 1
    use_pack = pack > 1
    # batch rows per (8 sublane x 128 lane) unit of the (possibly reshaped) I/O slab
    align = 8 * pack

    kparams = _pack_block_diag(params, pack) if use_pack else list(params)
    param_bytes = int(sum(w.size * w.dtype.itemsize + b.size * b.dtype.itemsize
                          for w, b in kparams))

    # ---- choose the batch tile (biggest lever: big tiles, not 8-row tiles) ----
    B_al = _round_up(B, align)
    bt = max(align, (min(max_batch_tile, B_al) // align) * align)
    # v7x has 2 TensorCores: keep >= 2 parallel grid steps when there is enough work.
    if B_al // bt < 2 and B_al >= 2 * align:
        bt = _round_up(pl.cdiv(B_al, 2), align)

    # ---- explicit VMEM budget: double-buffered x+out tiles + resident params ----
    VMEM_BUDGET = 48 * 1024 * 1024            # well under v7x's 64 MiB physical VMEM

    def vmem_needed(tile_rows):
        io = 2 * 2 * tile_rows * D * itemsize          # (x + out) x double buffer
        return io + 2 * param_bytes + (2 << 20)        # resident params + headroom

    while bt > align and vmem_needed(bt) > VMEM_BUDGET:
        bt -= align

    B_pad = _round_up(B, bt)
    xp = x if B_pad == B else jnp.pad(x, ((0, B_pad - B), (0, 0)))

    if use_pack:
        rows_tile = bt * D // 128                      # packed rows per grid step
        xk = xp.reshape(B_pad * D // 128, 128)         # row-major view, no data movement
        io_block = (rows_tile, 128)
        out_shape = jax.ShapeDtypeStruct((B_pad * D // 128, 128), x.dtype)
    else:
        xk = xp
        io_block = (bt, D)
        out_shape = jax.ShapeDtypeStruct((B_pad, D), x.dtype)

    grid = (B_pad // bt,)

    x_spec = pl.BlockSpec(io_block, lambda i: (i, 0))
    out_spec = pl.BlockSpec(io_block, lambda i: (i, 0))

    # Whole-array, constant-index blocks: the pipeline only re-DMAs a block when
    # its block index changes, so weights/biases stay VMEM-resident across steps.
    param_specs, flat_params = [], []
    for w, b in kparams:
        param_specs.append(pl.BlockSpec(w.shape, lambda i: (0, 0)))
        param_specs.append(pl.BlockSpec(b.shape, lambda i: (0, 0)))
        flat_params.extend([w, b])

    matmul_rows = (B_pad * D // 128) if use_pack else B_pad
    cost = pl.CostEstimate(
        flops=int(2 * matmul_rows *
                  sum(int(w.shape[0]) * int(w.shape[1]) for w, _ in kparams)),
        transcendentals=0,
        bytes_accessed=int(2 * B_pad * D * itemsize + param_bytes),
    )

    out = pl.pallas_call(
        _mlp_chain_kernel,
        out_shape=out_shape,
        grid_spec=pltpu.PrefetchScalarGridSpec(
            num_scalar_prefetch=0,
            grid=grid,
            in_specs=[x_spec] + param_specs,
            out_specs=out_spec,
        ),
        compiler_params=pltpu.CompilerParams(
            dimension_semantics=("parallel",),
            vmem_limit_bytes=VMEM_BUDGET,
        ),
        cost_estimate=cost,
    )(xk, *flat_params)

    if use_pack:
        out = out.reshape(B_pad, D)
    return out[:B]


def init_params(key, input_dim, hidden_dims=(64, 32, 16)):
    """Deterministic init mirroring the PyTorch module's layer shapes.
    Weights are returned pre-transposed to (in, out); biases are (1, out)."""
    dims_enc = [input_dim] + list(hidden_dims)                                      # D->64->32->16
    dims_dec = [hidden_dims[-1]] + list(reversed(hidden_dims[:-1])) + [input_dim]   # 16->32->64->D
    layer_dims = list(zip(dims_enc[:-1], dims_enc[1:])) + list(zip(dims_dec[:-1], dims_dec[1:]))

    params = []
    for (din, dout) in layer_dims:
        key, kw, kb = jax.random.split(key, 3)
        scale = 1.0 / jnp.sqrt(jnp.float32(din))
        w = jax.random.uniform(kw, (din, dout), jnp.float32, -scale, scale)
        b = jax.random.uniform(kb, (1, dout), jnp.float32, -scale, scale)
        params.append((w, b))
    return params


def autoencoder_ref(x, params):
    """Pure-JAX reference for correctness checking."""
    h = x
    n = len(params)
    for idx, (w, b) in enumerate(params):
        h = h @ w + b
        if idx != n - 1:
            h = jnp.maximum(h, 0.0)
    return h


if __name__ == "__main__":
    key = jax.random.PRNGKey(0)
    kx, kp = jax.random.split(key)

    B, D = 16, 32                      # small demo shapes: batch=16, input_dim=32
    x = jax.random.normal(kx, (B, D), jnp.float32)
    params = init_params(kp, D)

    out = autoencoder_forward(x, params)
    out = jax.block_until_ready(out)

    ref = autoencoder_ref(x, params)
    assert out.shape == (B, D)
    assert jnp.allclose(out, ref, atol=1e-4, rtol=1e-4), "mismatch vs reference"

    print("KERNEL_OK")
</pallas_src>

<mosaic_0001>
module attributes {stable_mosaic.version = 11 : i64} {
  func.func @_mlp_chain_kernel(%arg0: i32, %arg1: memref<8x128xf32, #tpu.memory_space<vmem>>, %arg2: memref<128x256xf32, #tpu.memory_space<vmem>>, %arg3: memref<1x256xf32, #tpu.memory_space<vmem>>, %arg4: memref<256x128xf32, #tpu.memory_space<vmem>>, %arg5: memref<1x128xf32, #tpu.memory_space<vmem>>, %arg6: memref<128x64xf32, #tpu.memory_space<vmem>>, %arg7: memref<1x64xf32, #tpu.memory_space<vmem>>, %arg8: memref<64x128xf32, #tpu.memory_space<vmem>>, %arg9: memref<1x128xf32, #tpu.memory_space<vmem>>, %arg10: memref<128x256xf32, #tpu.memory_space<vmem>>, %arg11: memref<1x256xf32, #tpu.memory_space<vmem>>, %arg12: memref<256x128xf32, #tpu.memory_space<vmem>>, %arg13: memref<1x128xf32, #tpu.memory_space<vmem>>, %arg14: memref<8x128xf32, #tpu.memory_space<vmem>>) attributes {dimension_semantics = [#tpu.dimension_semantics<parallel>], iteration_bounds = array<i64: 1>, scalar_prefetch = 0 : i64, scratch_operands = 0 : i64, tpu.core_type = #tpu.core_type<tc>, window_params = [{transform_indices = @transform_0, window_bounds = array<i64: 8, 128>}, {pipeline_mode = #tpu.pipeline_mode<synchronous>, transform_indices = @transform_1, window_bounds = array<i64: 128, 256>}, {pipeline_mode = #tpu.pipeline_mode<synchronous>, transform_indices = @transform_2, window_bounds = array<i64: 1, 256>}, {pipeline_mode = #tpu.pipeline_mode<synchronous>, transform_indices = @transform_3, window_bounds = array<i64: 256, 128>}, {pipeline_mode = #tpu.pipeline_mode<synchronous>, transform_indices = @transform_4, window_bounds = array<i64: 1, 128>}, {pipeline_mode = #tpu.pipeline_mode<synchronous>, transform_indices = @transform_5, window_bounds = array<i64: 128, 64>}, {pipeline_mode = #tpu.pipeline_mode<synchronous>, transform_indices = @transform_6, window_bounds = array<i64: 1, 64>}, {pipeline_mode = #tpu.pipeline_mode<synchronous>, transform_indices = @transform_7, window_bounds = array<i64: 64, 128>}, {pipeline_mode = #tpu.pipeline_mode<synchronous>, transform_indices = @transform_8, window_bounds = array<i64: 1, 128>}, {pipeline_mode = #tpu.pipeline_mode<synchronous>, transform_indices = @transform_9, window_bounds = array<i64: 128, 256>}, {pipeline_mode = #tpu.pipeline_mode<synchronous>, transform_indices = @transform_10, window_bounds = array<i64: 1, 256>}, {pipeline_mode = #tpu.pipeline_mode<synchronous>, transform_indices = @transform_11, window_bounds = array<i64: 256, 128>}, {pipeline_mode = #tpu.pipeline_mode<synchronous>, transform_indices = @transform_12, window_bounds = array<i64: 1, 128>}, {transform_indices = @transform_13, window_bounds = array<i64: 8, 128>}]} {
    %c0 = arith.constant 0 : index
    %c0_0 = arith.constant 0 : index
    %0 = vector.load %arg1[%c0, %c0_0] : memref<8x128xf32, #tpu.memory_space<vmem>>, vector<8x128xf32>
    %c0_1 = arith.constant 0 : index
    %c0_2 = arith.constant 0 : index
    %1 = vector.load %arg2[%c0_1, %c0_2] : memref<128x256xf32, #tpu.memory_space<vmem>>, vector<128x256xf32>
    %c0_3 = arith.constant 0 : index
    %c0_4 = arith.constant 0 : index
    %2 = vector.load %arg3[%c0_3, %c0_4] : memref<1x256xf32, #tpu.memory_space<vmem>>, vector<1x256xf32>
    %cst = arith.constant dense<0.000000e+00> : vector<8x256xf32>
    %3 = tpu.matmul %0, %1, %cst {dimension_numbers = #tpu.dot_dimension_numbers<[1], [0], [0], [1], [0, 0, 1, 1], [], []>} : vector<8x128xf32>, vector<128x256xf32>, vector<8x256xf32> -> vector<8x256xf32>
    %4 = vector.broadcast %2 : vector<1x256xf32> to vector<8x256xf32>
    %5 = arith.addf %3, %4 : vector<8x256xf32>
    %cst_5 = arith.constant 0.000000e+00 : f32
    %6 = vector.broadcast %cst_5 : f32 to vector<8x256xf32>
    %7 = arith.maximumf %5, %6 : vector<8x256xf32>
    %c0_6 = arith.constant 0 : index
    %c0_7 = arith.constant 0 : index
    %8 = vector.load %arg4[%c0_6, %c0_7] : memref<256x128xf32, #tpu.memory_space<vmem>>, vector<256x128xf32>
    %c0_8 = arith.constant 0 : index
    %c0_9 = arith.constant 0 : index
    %9 = vector.load %arg5[%c0_8, %c0_9] : memref<1x128xf32, #tpu.memory_space<vmem>>, vector<1x128xf32>
    %cst_10 = arith.constant dense<0.000000e+00> : vector<8x128xf32>
    %10 = tpu.matmul %7, %8, %cst_10 {dimension_numbers = #tpu.dot_dimension_numbers<[1], [0], [0], [1], [0, 0, 1, 1], [], []>} : vector<8x256xf32>, vector<256x128xf32>, vector<8x128xf32> -> vector<8x128xf32>
    %11 = vector.broadcast %9 : vector<1x128xf32> to vector<8x128xf32>
    %12 = arith.addf %10, %11 : vector<8x128xf32>
    %cst_11 = arith.constant 0.000000e+00 : f32
    %13 = vector.broadcast %cst_11 : f32 to vector<8x128xf32>
    %14 = arith.maximumf %12, %13 : vector<8x128xf32>
    %c0_12 = arith.constant 0 : index
    %c0_13 = arith.constant 0 : index
    %15 = vector.load %arg6[%c0_12, %c0_13] : memref<128x64xf32, #tpu.memory_space<vmem>>, vector<128x64xf32>
    %c0_14 = arith.constant 0 : index
    %c0_15 = arith.constant 0 : index
    %16 = vector.load %arg7[%c0_14, %c0_15] : memref<1x64xf32, #tpu.memory_space<vmem>>, vector<1x64xf32>
    %cst_16 = arith.constant dense<0.000000e+00> : vector<8x64xf32>
    %17 = tpu.matmul %14, %15, %cst_16 {dimension_numbers = #tpu.dot_dimension_numbers<[1], [0], [0], [1], [0, 0, 1, 1], [], []>} : vector<8x128xf32>, vector<128x64xf32>, vector<8x64xf32> -> vector<8x64xf32>
    %18 = vector.broadcast %16 : vector<1x64xf32> to vector<8x64xf32>
    %19 = arith.addf %17, %18 : vector<8x64xf32>
    %cst_17 = arith.constant 0.000000e+00 : f32
    %20 = vector.broadcast %cst_17 : f32 to vector<8x64xf32>
    %21 = arith.maximumf %19, %20 : vector<8x64xf32>
    %c0_18 = arith.constant 0 : index
    %c0_19 = arith.constant 0 : index
    %22 = vector.load %arg8[%c0_18, %c0_19] : memref<64x128xf32, #tpu.memory_space<vmem>>, vector<64x128xf32>
    %c0_20 = arith.constant 0 : index
    %c0_21 = arith.constant 0 : index
    %23 = vector.load %arg9[%c0_20, %c0_21] : memref<1x128xf32, #tpu.memory_space<vmem>>, vector<1x128xf32>
    %cst_22 = arith.constant dense<0.000000e+00> : vector<8x128xf32>
    %24 = tpu.matmul %21, %22, %cst_22 {dimension_numbers = #tpu.dot_dimension_numbers<[1], [0], [0], [1], [0, 0, 1, 1], [], []>} : vector<8x64xf32>, vector<64x128xf32>, vector<8x128xf32> -> vector<8x128xf32>
    %25 = vector.broadcast %23 : vector<1x128xf32> to vector<8x128xf32>
    %26 = arith.addf %24, %25 : vector<8x128xf32>
    %cst_23 = arith.constant 0.000000e+00 : f32
    %27 = vector.broadcast %cst_23 : f32 to vector<8x128xf32>
    %28 = arith.maximumf %26, %27 : vector<8x128xf32>
    %c0_24 = arith.constant 0 : index
    %c0_25 = arith.constant 0 : index
    %29 = vector.load %arg10[%c0_24, %c0_25] : memref<128x256xf32, #tpu.memory_space<vmem>>, vector<128x256xf32>
    %c0_26 = arith.constant 0 : index
    %c0_27 = arith.constant 0 : index
    %30 = vector.load %arg11[%c0_26, %c0_27] : memref<1x256xf32, #tpu.memory_space<vmem>>, vector<1x256xf32>
    %cst_28 = arith.constant dense<0.000000e+00> : vector<8x256xf32>
    %31 = tpu.matmul %28, %29, %cst_28 {dimension_numbers = #tpu.dot_dimension_numbers<[1], [0], [0], [1], [0, 0, 1, 1], [], []>} : vector<8x128xf32>, vector<128x256xf32>, vector<8x256xf32> -> vector<8x256xf32>
    %32 = vector.broadcast %30 : vector<1x256xf32> to vector<8x256xf32>
    %33 = arith.addf %31, %32 : vector<8x256xf32>
    %cst_29 = arith.constant 0.000000e+00 : f32
    %34 = vector.broadcast %cst_29 : f32 to vector<8x256xf32>
    %35 = arith.maximumf %33, %34 : vector<8x256xf32>
    %c0_30 = arith.constant 0 : index
    %c0_31 = arith.constant 0 : index
    %36 = vector.load %arg12[%c0_30, %c0_31] : memref<256x128xf32, #tpu.memory_space<vmem>>, vector<256x128xf32>
    %c0_32 = arith.constant 0 : index
    %c0_33 = arith.constant 0 : index
    %37 = vector.load %arg13[%c0_32, %c0_33] : memref<1x128xf32, #tpu.memory_space<vmem>>, vector<1x128xf32>
    %cst_34 = arith.constant dense<0.000000e+00> : vector<8x128xf32>
    %38 = tpu.matmul %35, %36, %cst_34 {dimension_numbers = #tpu.dot_dimension_numbers<[1], [0], [0], [1], [0, 0, 1, 1], [], []>} : vector<8x256xf32>, vector<256x128xf32>, vector<8x128xf32> -> vector<8x128xf32>
    %39 = vector.broadcast %37 : vector<1x128xf32> to vector<8x128xf32>
    %40 = arith.addf %38, %39 : vector<8x128xf32>
    %c0_35 = arith.constant 0 : index
    %c0_36 = arith.constant 0 : index
    %41 = vector.load %arg14[%c0_35, %c0_36] : memref<8x128xf32, #tpu.memory_space<vmem>>, vector<8x128xf32>
    tpu.vector_store %arg14[%c0_35, %c0_36], %40 {strides = array<i32>} : memref<8x128xf32, #tpu.memory_space<vmem>>, vector<8x128xf32>,
    return
  }
  func.func @transform_0(%arg0: i32) -> (i32, i32) {
    %c0_i32 = arith.constant 0 : i32
    %c0_i32_0 = arith.constant 0 : i32
    return %arg0, %c0_i32 : i32, i32
  }
  func.func @transform_1(%arg0: i32) -> (i32, i32) {
    %c0_i32 = arith.constant 0 : i32
    %c0_i32_0 = arith.constant 0 : i32
    %c0_i32_1 = arith.constant 0 : i32
    return %c0_i32, %c0_i32_0 : i32, i32
  }
  func.func @transform_2(%arg0: i32) -> (i32, i32) {
    %c0_i32 = arith.constant 0 : i32
    %c0_i32_0 = arith.constant 0 : i32
    %c0_i32_1 = arith.constant 0 : i32
    return %c0_i32, %c0_i32_0 : i32, i32
  }
  func.func @transform_3(%arg0: i32) -> (i32, i32) {
    %c0_i32 = arith.constant 0 : i32
    %c0_i32_0 = arith.constant 0 : i32
    %c0_i32_1 = arith.constant 0 : i32
    return %c0_i32, %c0_i32_0 : i32, i32
  }
  func.func @transform_4(%arg0: i32) -> (i32, i32) {
    %c0_i32 = arith.constant 0 : i32
    %c0_i32_0 = arith.constant 0 : i32
    %c0_i32_1 = arith.constant 0 : i32
    return %c0_i32, %c0_i32_0 : i32, i32
  }
  func.func @transform_5(%arg0: i32) -> (i32, i32) {
    %c0_i32 = arith.constant 0 : i32
    %c0_i32_0 = arith.constant 0 : i32
    %c0_i32_1 = arith.constant 0 : i32
    return %c0_i32, %c0_i32_0 : i32, i32
  }
  func.func @transform_6(%arg0: i32) -> (i32, i32) {
    %c0_i32 = arith.constant 0 : i32
    %c0_i32_0 = arith.constant 0 : i32
    %c0_i32_1 = arith.constant 0 : i32
    return %c0_i32, %c0_i32_0 : i32, i32
  }
  func.func @transform_7(%arg0: i32) -> (i32, i32) {
    %c0_i32 = arith.constant 0 : i32
    %c0_i32_0 = arith.constant 0 : i32
    %c0_i32_1 = arith.constant 0 : i32
    return %c0_i32, %c0_i32_0 : i32, i32
  }
  func.func @transform_8(%arg0: i32) -> (i32, i32) {
    %c0_i32 = arith.constant 0 : i32
    %c0_i32_0 = arith.constant 0 : i32
    %c0_i32_1 = arith.constant 0 : i32
    return %c0_i32, %c0_i32_0 : i32, i32
  }
  func.func @transform_9(%arg0: i32) -> (i32, i32) {
    %c0_i32 = arith.constant 0 : i32
    %c0_i32_0 = arith.constant 0 : i32
    %c0_i32_1 = arith.constant 0 : i32
    return %c0_i32, %c0_i32_0 : i32, i32
  }
  func.func @transform_10(%arg0: i32) -> (i32, i32) {
    %c0_i32 = arith.constant 0 : i32
    %c0_i32_0 = arith.constant 0 : i32
    %c0_i32_1 = arith.constant 0 : i32
    return %c0_i32, %c0_i32_0 : i32, i32
  }
  func.func @transform_11(%arg0: i32) -> (i32, i32) {
    %c0_i32 = arith.constant 0 : i32
    %c0_i32_0 = arith.constant 0 : i32
    %c0_i32_1 = arith.constant 0 : i32
    return %c0_i32, %c0_i32_0 : i32, i32
  }
  func.func @transform_12(%arg0: i32) -> (i32, i32) {
    %c0_i32 = arith.constant 0 : i32
    %c0_i32_0 = arith.constant 0 : i32
    %c0_i32_1 = arith.constant 0 : i32
    return %c0_i32, %c0_i32_0 : i32, i32
  }
  func.func @transform_13(%arg0: i32) -> (i32, i32) {
    %c0_i32 = arith.constant 0 : i32
    %c0_i32_0 = arith.constant 0 : i32
    return %arg0, %c0_i32 : i32, i32
  }
}

</mosaic_0001>

<bundles_post_ra>
// kernel: tpu_custom_call.1
= control target key start
LH: loop header
LB: loop body
LE: loop exit
PB: predicated region body
PF: predicated region fallthrough
CT: control target
= control target key end

     0   :  { %18 = vsyncpa [#allocation3], 0  ;;  %s1265_s0 = inlined_call_operand.vmem [shape: f32[8,128], index: 0, kind: input, shape index: {}]   ;;  %s1266_s1 = inlined_call_operand.hbm [shape: f32[128,256], index: 1, kind: input, shape index: {}]   ;;  %s1267_s2 = inlined_call_operand.vmem [shape: f32[1,256], index: 2, kind: input, shape index: {}]   ;;  %s1268_s3 = inlined_call_operand.hbm [shape: f32[256,128], index: 3, kind: input, shape index: {}]   ;;  %s1269_s4 = inlined_call_operand.vmem [shape: f32[1,128], index: 4, kind: input, shape index: {}]   ;;  %s1270_s5 = inlined_call_operand.vmem [shape: f32[128,64], index: 5, kind: input, shape index: {}]   ;;  %s1271_s6 = inlined_call_operand.vmem [shape: f32[1,64], index: 6, kind: input, shape index: {}]   ;;  %s1272_s7 = inlined_call_operand.vmem [shape: f32[64,128], index: 7, kind: input, shape index: {}]   ;;  %s1273_s8 = inlined_call_operand.vmem [shape: f32[1,128], index: 8, kind: input, shape index: {}]   ;;  %s1274_s9 = inlined_call_operand.hbm [shape: f32[128,256], index: 9, kind: input, shape index: {}]   ;;  %s1275_s10 = inlined_call_operand.vmem [shape: f32[1,256], index: 10, kind: input, shape index: {}]   ;;  %s1276_s11 = inlined_call_operand.hbm [shape: f32[256,128], index: 11, kind: input, shape index: {}]   ;;  %s1277_s12 = inlined_call_operand.vmem [shape: f32[1,128], index: 12, kind: input, shape index: {}]   ;;  %s1278_s13 = inlined_call_operand.hbm [shape: f32[8,128], index: 13, kind: output, shape index: {}]  }
   0x1   :  { %19 = vsyncpa [#allocation6], 0 }
   0x2   :  { %20 = vsyncpa [#allocation9], 0 }
   0x3   :  { %21 = vsyncpa [#allocation4], 0  ;;  %s1030_s25 = smov [#allocation5]  }
   0x4   :  { %s43_s26 = sshll.u32 %s1030_s25, 4  ;;  %s44_s26 = int_to_ptr.vmem [resolvable:$true] %s43_s26 }
   0x5   :  { %s930_s27 = scalar_lea.vmem %s44_s26, 4096  ;;  %p935_p1 = scmp.lt.s32.totalorder %s44_s26, %s44_s26 }
   0x6   :  { %p931_p0 = scmp.ne.s32.totalorder %s44_s26, %s930_s27  ;;  %p936_p2 = scmp.lt.s32.totalorder %s930_s27, %s930_s27 }
   0x8   :  { %p937_p3 = por %p936_p2, %p935_p1 }
   0xa   :  { %p938_p4 = pnand %p937_p3, %p931_p0 }
   0xc   :  { %941 = shalt.err (!%p938_p4)
}
   0xd   :  { %s1031_s28 = smov 128   ;;  %s1032_s29 = smov 8  }
   0xe   :  { %49 = dma.hbm_to_vmem [thread:$0]  %s1268_s3, 4096, %s44_s26, [#allocation6], %s1031_s28, %s1031_s28, %s1032_s29  }
   0xf   :  { %s1033_s15 = smov [#allocation2]  }
  0x10   :  { %s29_s16 = sshll.u32 %s1033_s15, 4  ;;  %s30_s16 = int_to_ptr.vmem [resolvable:$true] %s29_s16 }
  0x11   :  { %s950_s17 = scalar_lea.vmem %s30_s16, 4096  ;;  %p955_p6 = scmp.lt.s32.totalorder %s30_s16, %s30_s16 }
  0x12   :  { %p951_p5 = scmp.ne.s32.totalorder %s30_s16, %s950_s17  ;;  %p956_p7 = scmp.lt.s32.totalorder %s950_s17, %s950_s17 }
  0x14   :  { %p957_p8 = por %p956_p7, %p955_p6 }
  0x16   :  { %p958_p9 = pnand %p957_p8, %p951_p5 }
  0x18   :  { %961 = shalt.err (!%p958_p9)
}
  0x19   :  { %s1034_s18 = smov 256   ;;  %s1035_s19 = smov 16  }
  0x1a   :  { %35 = dma.hbm_to_vmem [thread:$0]  %s1266_s1, 4096, %s30_s16, [#allocation3], %s1034_s18, %s1034_s18, %s1035_s19  }
  0x1b   :  { %s1036_s22 = smov [#allocation7]   ;;  %s1037_s24 = smov [#allocation8]  }
  0x1c   :  { %s65_s23 = sshll.u32 %s1036_s22, 4  ;;  %s79_s3 = sshll.u32 %s1037_s24, 4  ;;  %s66_s23 = int_to_ptr.vmem [resolvable:$true] %s65_s23  ;;  %s80_s3 = int_to_ptr.vmem [resolvable:$true] %s79_s3 }
  0x1d   :  { %s970_s25 = scalar_lea.vmem %s66_s23, 4096  ;;  %p975_p11 = scmp.lt.s32.totalorder %s66_s23, %s66_s23 }
  0x1e   :  { %p971_p10 = scmp.ne.s32.totalorder %s66_s23, %s970_s25  ;;  %p976_p12 = scmp.lt.s32.totalorder %s970_s25, %s970_s25 }
  0x20   :  { %p977_p13 = por %p976_p12, %p975_p11 }
  0x22   :  { %p978_p0 = pnand %p977_p13, %p971_p10 }
  0x24   :  { %981 = shalt.err (!%p978_p0)
}
  0x25   :  { %71 = dma.hbm_to_vmem [thread:$0]  %s1274_s9, 4096, %s66_s23, [#allocation6], %s1034_s18, %s1034_s18, %s1035_s19  }
  0x26   :  { %s990_s30 = scalar_lea.vmem %s80_s3, 4096  ;;  %p995_p2 = scmp.lt.s32.totalorder %s80_s3, %s80_s3 }
  0x27   :  { %p991_p1 = scmp.ne.s32.totalorder %s80_s3, %s990_s30  ;;  %p996_p3 = scmp.lt.s32.totalorder %s990_s30, %s990_s30 }
  0x29   :  { %p997_p4 = por %p996_p3, %p995_p2 }
  0x2b   :  { %p998_p5 = pnand %p997_p4, %p991_p1 }
  0x2d   :  { %1001 = shalt.err (!%p998_p5)
}
  0x2e   :  { %85 = dma.hbm_to_vmem [thread:$0]  %s1276_s11, 4096, %s80_s3, [#allocation9], %s1031_s28, %s1031_s28, %s1032_s29  }
  0x2f   :  { %1022 = dma.done.wait [#allocation3], 4096  }
  0x30   :  { %1023 = vsyncadd [#allocation3], 4294963200 }
  0x31   :  { %1024 = dma.done.wait [#allocation6], 8192  }
  0x32   :  { %1025 = vsyncadd [#allocation6], 4294959104 }
  0x33   :  { %1026 = dma.done.wait [#allocation9], 4096  }
  0x34   :  { %1027 = vsyncadd [#allocation9], 4294963200  ;;  %v1038_v0 = vmov 0.0   ;;  %v132_v1 = vld [vmem:[#allocation2 + $0xf8] sm:$0xff]  ;;  %v131_v2 = vld [vmem:[#allocation2 + $0xf0] sm:$0xff]  ;;  %vm1039_vm0 = vmmov 0  }
  0x35   :  { %209 = vmatprep.mubr.f32.mxu0 %v1038_v0  ;;  %v130_v3 = vld [vmem:[#allocation2 + $0xe8] sm:$0xff]  ;;  %145 = vmatprep.subr.mxu0 %v132_v1  ;;  %v129_v4 = vld [vmem:[#allocation2 + $0xe0] sm:$0xff]  ;;  %v128_v5 = vld [vmem:[#allocation2 + $0xd8] sm:$0xff]  ;;  %vm437_vm1 = vcmask 523264  }
  0x36   :  { %146 = vmatpush1.msra.mxu0 %v131_v2  ;;  %v127_v6 = vld [vmem:[#allocation2 + $0xd0] sm:$0xff]  ;;  %v126_v7 = vld [vmem:[#allocation2 + $0xc8] sm:$0xff]  ;;  %v125_v8 = vld [vmem:[#allocation2 + $0xc0] sm:$0xff] }
  0x37   :  { %147 = vmatprep.subr.mxu0 %v130_v3  ;;  %v124_v9 = vld [vmem:[#allocation2 + $0xb8] sm:$0xff]  ;;  %v123_v10 = vld [vmem:[#allocation2 + $0xb0] sm:$0xff]  ;;  %v122_v11 = vld [vmem:[#allocation2 + $0xa8] sm:$0xff] }
  0x38   :  { %148 = vmatpush1.msra.mxu0 %v129_v4  ;;  %v121_v12 = vld [vmem:[#allocation2 + $0xa0] sm:$0xff]  ;;  %v120_v13 = vld [vmem:[#allocation2 + $0x98] sm:$0xff]  ;;  %v119_v14 = vld [vmem:[#allocation2 + $0x90] sm:$0xff] }
  0x39   :  { %149 = vmatprep.subr.mxu0 %v128_v5  ;;  %v249_v15 = vld [vmem:[#allocation5 + $0xf8] sm:$0xff]  ;;  %v248_v17 = vld [vmem:[#allocation5 + $0xf0] sm:$0xff]  ;;  %v118_v18 = vld [vmem:[#allocation2 + $0x88] sm:$0xff] }
  0x3a   :  { %150 = vmatpush1.msra.mxu0 %v127_v6  ;;  %v233_v16 = vld [vmem:[#allocation5 + $0x78] sm:$0xff]  ;;  %761 = vmatprep.subr.mxu1 %v249_v15  ;;  %v232_v19 = vld [vmem:[#allocation5 + $0x70] sm:$0xff]  ;;  %v117_v20 = vld [vmem:[#allocation2 + $0x80] sm:$0xff] }
  0x3b   :  { %151 = vmatprep.subr.mxu0 %v126_v7  ;;  %762 = vmatpush3.msra.mxu1 %v233_v16  ;;  %v247_v21 = vld [vmem:[#allocation5 + $0xe8] sm:$0xff]  ;;  %v116_v22 = vld [vmem:[#allocation2 + $0x78] sm:$0xff]  ;;  %v115_v24 = vld [vmem:[#allocation2 + $0x70] sm:$0xff] }
  0x3c   :  { %152 = vmatpush1.msra.mxu0 %v125_v8  ;;  %763 = vmatprep.subr.mxu1 %v248_v17  ;;  %v231_v23 = vld [vmem:[#allocation5 + $0x68] sm:$0xff]  ;;  %v246_v25 = vld [vmem:[#allocation5 + $0xe0] sm:$0xff]  ;;  %v245_v29 = vld [vmem:[#allocation5 + $0xd8] sm:$0xff] }
  0x3d   :  { %153 = vmatprep.subr.mxu0 %v124_v9  ;;  %764 = vmatpush3.msra.mxu1 %v232_v19  ;;  %v114_v26 = vld [vmem:[#allocation2 + $0x68] sm:$0xff]  ;;  %v230_v27 = vld [vmem:[#allocation5 + $0x60] sm:$0xff]  ;;  %v112_v30 = vld [vmem:[#allocation2 + $0x58] sm:$0xff] }
  0x3e   :  { %154 = vmatpush1.msra.mxu0 %v123_v10  ;;  %765 = vmatprep.subr.mxu1 %v247_v21  ;;  %v113_v28 = vld [vmem:[#allocation2 + $0x60] sm:$0xff]  ;;  %v229_v31 = vld [vmem:[#allocation5 + $0x58] sm:$0xff]  ;;  %v111_v32 = vld [vmem:[#allocation2 + $0x50] sm:$0xff] }
  0x3f   :  { %155 = vmatprep.subr.mxu0 %v122_v11  ;;  %766 = vmatpush3.msra.mxu1 %v231_v23  ;;  %v244_v33 = vld [vmem:[#allocation5 + $0xd0] sm:$0xff]  ;;  %v110_v34 = vld [vmem:[#allocation2 + $0x48] sm:$0xff]  ;;  %v109_v36 = vld [vmem:[#allocation2 + $0x40] sm:$0xff] }
  0x40   :  { %156 = vmatpush1.msra.mxu0 %v121_v12  ;;  %767 = vmatprep.subr.mxu1 %v246_v25  ;;  %v228_v35 = vld [vmem:[#allocation5 + $0x50] sm:$0xff]  ;;  %v243_v37 = vld [vmem:[#allocation5 + $0xc8] sm:$0xff]  ;;  %v108_v38 = vld [vmem:[#allocation2 + $0x38] sm:$0xff] }
  0x41   :  { %157 = vmatprep.subr.mxu0 %v120_v13  ;;  %768 = vmatpush3.msra.mxu1 %v230_v27  ;;  %v227_v39 = vld [vmem:[#allocation5 + $0x48] sm:$0xff]  ;;  %v107_v40 = vld [vmem:[#allocation2 + $0x30] sm:$0xff]  ;;  %v242_v41 = vld [vmem:[#allocation5 + $0xc0] sm:$0xff] }
  0x42   :  { %158 = vmatpush1.msra.mxu0 %v119_v14  ;;  %769 = vmatprep.subr.mxu1 %v245_v29  ;;  %v106_v42 = vld [vmem:[#allocation2 + $0x28] sm:$0xff]  ;;  %v226_v43 = vld [vmem:[#allocation5 + $0x40] sm:$0xff]  ;;  %v241_v45 = vld [vmem:[#allocation5 + $0xb8] sm:$0xff]  ;;  %v135_v14 = vlaneseq }
  0x43   :  { %159 = vmatprep.subr.mxu0 %v118_v18  ;;  %770 = vmatpush3.msra.mxu1 %v229_v31  ;;  %v105_v44 = vld [vmem:[#allocation2 + $0x20] sm:$0xff]  ;;  %v104_v46 = vld [vmem:[#allocation2 + $0x18] sm:$0xff]  ;;  %v103_v48 = vld [vmem:[#allocation2 + $0x10] sm:$0xff] }
  0x44   :  { %160 = vmatpush1.msra.mxu0 %v117_v20  ;;  %771 = vmatprep.subr.mxu1 %v244_v33  ;;  %v225_v47 = vld [vmem:[#allocation5 + $0x38] sm:$0xff]  ;;  %v240_v49 = vld [vmem:[#allocation5 + $0xb0] sm:$0xff]  ;;  %v102_v50 = vld [vmem:[#allocation2 + $0x8] sm:$0xff]  ;;  %v1179_v15 = vshrl.u32 %v135_v14, 7 }
  0x45   :  { %161 = vmatprep.subr.mxu0 %v116_v22  ;;  %772 = vmatpush3.msra.mxu1 %v228_v35  ;;  %v224_v51 = vld [vmem:[#allocation5 + $0x30] sm:$0xff]  ;;  %v101_v52 = vld [vmem:[#allocation2] sm:$0xff]  ;;  %v239_v53 = vld [vmem:[#allocation5 + $0xa8] sm:$0xff] }
  0x46   :  { %162 = vmatpush1.msra.mxu0 %v115_v24  ;;  %773 = vmatprep.subr.mxu1 %v243_v37  ;;  %v100_v54 = vld [vmem:[%s1265_s0] sm:$0xff]  ;;  %v223_v55 = vld [vmem:[#allocation5 + $0x28] sm:$0xff]  ;;  %v237_v58 = vld [vmem:[#allocation5 + $0x98] sm:$0xff]  ;;  %v137_v16 = vsub.s32 0, %v1179_v15  ;;  %v141_v18 = vsub.s32 1, %v1179_v15 }
  0x47   :  { %163 = vmatprep.subr.mxu0 %v114_v26  ;;  %774 = vmatpush3.msra.mxu1 %v227_v39  ;;  %v238_v56 = vld [vmem:[#allocation5 + $0xa0] sm:$0xff]  ;;  %v221_v59 = vld [vmem:[#allocation5 + $0x18] sm:$0xff]  ;;  %v236_v60 = vld [vmem:[#allocation5 + $0x90] sm:$0xff] }
  0x48   :  { %164 = vmatpush1.msra.mxu0 %v113_v28  ;;  %775 = vmatprep.subr.mxu1 %v242_v41  ;;  %v222_v57 = vld [vmem:[#allocation5 + $0x20] sm:$0xff]  ;;  %v220_v61 = vld [vmem:[#allocation5 + $0x10] sm:$0xff]  ;;  %v235_v62 = vld [vmem:[#allocation5 + $0x88] sm:$0xff] }
  0x49   :  { %165 = vmatprep.subr.mxu0 %v112_v30  ;;  %776 = vmatpush3.msra.mxu1 %v226_v43  ;;  %v219_v63 = vld [vmem:[#allocation5 + $0x8] sm:$0xff]  ;;  %v234_v1 = vld [vmem:[#allocation5 + $0x80] sm:$0xff]  ;;  %v343_v3 = vld [vmem:[%s1270_s5 + $0x78] sm:$0xff] }
  0x4a   :  { %166 = vmatpush1.msra.mxu0 %v111_v32  ;;  %777 = vmatprep.subr.mxu1 %v241_v45  ;;  %v218_v2 = vld [vmem:[#allocation5] sm:$0xff]  ;;  %v342_v4 = vld [vmem:[%s1270_s5 + $0x70] sm:$0xff]  ;;  %v341_v5 = vld [vmem:[%s1270_s5 + $0x68] sm:$0xff] }
  0x4b   :  { %167 = vmatprep.subr.mxu0 %v110_v34  ;;  %778 = vmatpush3.msra.mxu1 %v225_v47  ;;  %v340_v6 = vld [vmem:[%s1270_s5 + $0x60] sm:$0xff]  ;;  %v339_v7 = vld [vmem:[%s1270_s5 + $0x58] sm:$0xff]  ;;  %v338_v8 = vld [vmem:[%s1270_s5 + $0x50] sm:$0xff] }
  0x4c   :  { %168 = vmatpush1.msra.mxu0 %v109_v36  ;;  %779 = vmatprep.subr.mxu1 %v240_v49  ;;  %v337_v9 = vld [vmem:[%s1270_s5 + $0x48] sm:$0xff]  ;;  %v336_v10 = vld [vmem:[%s1270_s5 + $0x40] sm:$0xff]  ;;  %v335_v11 = vld [vmem:[%s1270_s5 + $0x38] sm:$0xff] }
  0x4d   :  { %169 = vmatprep.subr.mxu0 %v108_v38  ;;  %780 = vmatpush3.msra.mxu1 %v224_v51  ;;  %v334_v12 = vld [vmem:[%s1270_s5 + $0x30] sm:$0xff]  ;;  %v333_v13 = vld [vmem:[%s1270_s5 + $0x28] sm:$0xff]  ;;  %v133_v17 = vld [vmem:[%s1267_s2] sm:$0x3] }
  0x4e   :  { %170 = vmatpush1.msra.mxu0 %v107_v40  ;;  %781 = vmatprep.subr.mxu1 %v239_v53  ;;  %v138_v19 = vrot.slane %v133_v17, %v137_v16  ;;  %v142_v20 = vrot.slane %v133_v17, %v141_v18  ;;  %v332_v27 = vld [vmem:[%s1270_s5 + $0x20] sm:$0xff]  ;;  %v331_v28 = vld [vmem:[%s1270_s5 + $0x18] sm:$0xff]  ;;  %v330_v29 = vld [vmem:[%s1270_s5 + $0x10] sm:$0xff] }
  0x4f   :  { %171 = vmatprep.subr.mxu0 %v106_v42  ;;  %782 = vmatpush3.msra.mxu1 %v223_v55  ;;  %v329_v30 = vld [vmem:[%s1270_s5 + $0x8] sm:$0xff]  ;;  %v328_v31 = vld [vmem:[%s1270_s5] sm:$0xff]  ;;  %v429_v32 = vld [vmem:[%s1272_s7 + $0x38] sm:$0xff] }
  0x50   :  { %172 = vmatpush1.msra.mxu0 %v105_v44  ;;  %783 = vmatprep.subr.mxu1 %v238_v56  ;;  %v428_v33 = vld [vmem:[%s1272_s7 + $0x30] sm:$0xff]  ;;  %v427_v34 = vld [vmem:[%s1272_s7 + $0x28] sm:$0xff]  ;;  %v426_v35 = vld [vmem:[%s1272_s7 + $0x20] sm:$0xff] }
  0x51   :  { %173 = vmatprep.subr.mxu0 %v104_v46  ;;  %784 = vmatpush3.msra.mxu1 %v222_v57  ;;  %v425_v36 = vld [vmem:[%s1272_s7 + $0x18] sm:$0xff]  ;;  %v756_v38 = vld [vmem:[%s1269_s4] ss:$0 sm:$0xff]  ;;  %v424_v43 = vld [vmem:[%s1272_s7 + $0x10] sm:$0xff] }
  0x52   :  { %174 = vmatpush1.msra.mxu0 %v103_v48  ;;  %785 = vmatprep.subr.mxu1 %v237_v58  ;;  %v423_v44 = vld [vmem:[%s1272_s7 + $0x8] sm:$0xff]  ;;  %v422_v45 = vld [vmem:[%s1272_s7] sm:$0xff]  ;;  %v543_v46 = vld [vmem:[#allocation7 + $0xf8] sm:$0xff] }
  0x53   :  { %175 = vmatprep.subr.mxu0 %v102_v50  ;;  %786 = vmatpush3.msra.mxu1 %v221_v59  ;;  %v757_v47 = vld [vmem:[%s1271_s6] ss:$0 sm:$0xff]  ;;  %v541_v53 = vld [vmem:[#allocation7 + $0xe8] sm:$0xff]  ;;  %v539_v55 = vld [vmem:[#allocation7 + $0xd8] sm:$0xff] }
  0x54   :  { %176 = vmatpush1.msra.mxu0 %v101_v52  ;;  %787 = vmatprep.subr.mxu1 %v236_v60  ;;  %v542_v52 = vld [vmem:[#allocation7 + $0xf0] sm:$0xff]  ;;  %v537_v57 = vld [vmem:[#allocation7 + $0xc8] sm:$0xff]  ;;  %v536_v58 = vld [vmem:[#allocation7 + $0xc0] sm:$0xff] }
  0x55   :  { %210 = vmatmul.mubr.f32.vlgmr.msra.gmra.mxu0 %v100_v54  ;;  %857 = vmatprep.subr.mxu0 %v1038_v0  ;;  %v540_v54 = vld [vmem:[#allocation7 + $0xe0] sm:$0xff]  ;;  %v538_v56 = vld [vmem:[#allocation7 + $0xd0] sm:$0xff]  ;;  %v535_v59 = vld [vmem:[#allocation7 + $0xb8] sm:$0xff] }
  0x56   :  { %788 = vmatpush3.msra.mxu1 %v220_v61  ;;  %858 = vmatpush3.msra.mxu0 %v343_v3  ;;  %v534_v60 = vld [vmem:[#allocation7 + $0xb0] sm:$0xff]  ;;  %v533_v61 = vld [vmem:[#allocation7 + $0xa8] sm:$0xff]  ;;  %v527_v3 = vld [vmem:[#allocation7 + $0x78] sm:$0xff] }
  0x57   :  { %789 = vmatprep.subr.mxu1 %v235_v62  ;;  %859 = vmatprep.subr.mxu0 %v1038_v0  ;;  %v532_v62 = vld [vmem:[#allocation7 + $0xa0] sm:$0xff]  ;;  %v515_v17 = vld [vmem:[#allocation7 + $0x18] sm:$0xff] }
  0x58   :  { %790 = vmatpush3.msra.mxu1 %v219_v63  ;;  %860 = vmatpush3.msra.mxu0 %v342_v4  ;;  %v531_v63 = vld [vmem:[#allocation7 + $0x98] sm:$0xff]  ;;  %v526_v4 = vld [vmem:[#allocation7 + $0x70] sm:$0xff]  ;;  %v516_v14 = vld [vmem:[#allocation7 + $0x20] sm:$0xff] }
  0x59   :  { %791 = vmatprep.subr.mxu1 %v234_v1  ;;  %861 = vmatprep.subr.mxu0 %v1038_v0  ;;  %v530_v1 = vld [vmem:[#allocation7 + $0x90] sm:$0xff] }
  0x5a   :  { %792 = vmatpush3.msra.mxu1 %v218_v2  ;;  %862 = vmatpush3.msra.mxu0 %v341_v5  ;;  %v528_v2 = vld [vmem:[#allocation7 + $0x80] sm:$0xff]  ;;  %v525_v5 = vld [vmem:[#allocation7 + $0x68] sm:$0xff] }
  0x5b   :  { %892 = vmatprep.subr.mxu1 %v1038_v0  ;;  %863 = vmatprep.subr.mxu0 %v1038_v0 }
  0x5c   :  { %864 = vmatpush3.msra.mxu0 %v340_v6  ;;  %889 = vmatprep.mubr.msk.f32.mxu0 %vm1039_vm0, %v1038_v0  ;;  %v524_v6 = vld [vmem:[#allocation7 + $0x60] sm:$0xff] }
  0x5d   :  { %865 = vmatprep.subr.mxu0 %v1038_v0 }
  0x5e   :  { %866 = vmatpush3.msra.mxu0 %v339_v7  ;;  %v523_v7 = vld [vmem:[#allocation7 + $0x58] sm:$0xff] }
  0x5f   :  { %867 = vmatprep.subr.mxu0 %v1038_v0 }
  0x60   :  { %868 = vmatpush3.msra.mxu0 %v338_v8  ;;  %v522_v8 = vld [vmem:[#allocation7 + $0x50] sm:$0xff] }
  0x61   :  { %869 = vmatprep.subr.mxu0 %v1038_v0 }
  0x62   :  { %870 = vmatpush3.msra.mxu0 %v337_v9  ;;  %v521_v9 = vld [vmem:[#allocation7 + $0x48] sm:$0xff] }
  0x63   :  { %871 = vmatprep.subr.mxu0 %v1038_v0 }
  0x64   :  { %872 = vmatpush3.msra.mxu0 %v336_v10  ;;  %v520_v10 = vld [vmem:[#allocation7 + $0x40] sm:$0xff] }
  0x65   :  { %873 = vmatprep.subr.mxu0 %v1038_v0 }
  0x66   :  { %874 = vmatpush3.msra.mxu0 %v335_v11  ;;  %v519_v11 = vld [vmem:[#allocation7 + $0x38] sm:$0xff] }
  0x67   :  { %875 = vmatprep.subr.mxu0 %v1038_v0 }
  0x68   :  { %876 = vmatpush3.msra.mxu0 %v334_v12  ;;  %v518_v12 = vld [vmem:[#allocation7 + $0x30] sm:$0xff] }
  0x69   :  { %877 = vmatprep.subr.mxu0 %v1038_v0 }
  0x6a   :  { %878 = vmatpush3.msra.mxu0 %v333_v13  ;;  %v517_v13 = vld [vmem:[#allocation7 + $0x28] sm:$0xff] }
  0x6b   :  { %879 = vmatprep.subr.mxu0 %v1038_v0 }
  0x6c   :  { %880 = vmatpush3.msra.mxu0 %v332_v27  ;;  %v642_v27 = vld [vmem:[#allocation8 + $0x68] sm:$0xff] }
  0x6d   :  { %881 = vmatprep.subr.mxu0 %v1038_v0 }
  0x6e   :  { %882 = vmatpush3.msra.mxu0 %v331_v28  ;;  %v657_v28 = vld [vmem:[#allocation8 + $0xe0] sm:$0xff] }
  0x6f   :  { %883 = vmatprep.subr.mxu0 %v1038_v0 }
  0x70   :  { %884 = vmatpush3.msra.mxu0 %v330_v29  ;;  %v641_v29 = vld [vmem:[#allocation8 + $0x60] sm:$0xff] }
  0x71   :  { %885 = vmatprep.subr.mxu0 %v1038_v0 }
  0x72   :  { %886 = vmatpush3.msra.mxu0 %v329_v30  ;;  %v656_v30 = vld [vmem:[#allocation8 + $0xd8] sm:$0xff] }
  0x73   :  { %887 = vmatprep.subr.mxu0 %v1038_v0 }
  0x74   :  { %888 = vmatpush3.msra.mxu0 %v328_v31  ;;  %v640_v31 = vld [vmem:[#allocation8 + $0x58] sm:$0xff] }
 0x115   :  { %v211_v21 = vpop.f32.mrf.mxu0 }
 0x116   :  { %v212_v22 = vadd.f32 %v211_v21, %v138_v19  ;;  %v514_v19 = vld [vmem:[#allocation7 + $0x10] sm:$0xff]  ;;  %v512_v21 = vld [vmem:[#allocation7] sm:$0xff] }
 0x117   :  { %v213_v23 = vpop.f32.mrf.mxu0 }
 0x118   :  { %v214_v24 = vadd.f32 %v213_v23, %v142_v20  ;;  %v216_v26 = vmax.f32 %v212_v22, 0.0  ;;  %v513_v20 = vld [vmem:[#allocation7 + $0x8] sm:$0xff]  ;;  %v660_v22 = vld [vmem:[#allocation8 + $0xf8] sm:$0xff] }
 0x119   :  { %v644_v23 = vld [vmem:[#allocation8 + $0x78] sm:$0xff]  ;;  %822 = vmatprep.subr.mxu0 %v660_v22 }
 0x11a   :  { %v217_v25 = vmax.f32 %v214_v24, 0.0  ;;  %v659_v24 = vld [vmem:[#allocation8 + $0xf0] sm:$0xff] }
 0x11c   :  { %321 = vmatprep.mubr.f32.mxu1 %v217_v25  ;;  %v643_v25 = vld [vmem:[#allocation8 + $0x70] sm:$0xff] }
 0x11d   :  { %322 = vmatmul.mubr.f32.vlgmr.msra.gmra.mxu1 %v216_v26  ;;  %v658_v26 = vld [vmem:[#allocation8 + $0xe8] sm:$0xff] }
 0x11e   :  { %908 = vmatprep.mubr.msk.f32.mxu1 %vm1039_vm0, %v1038_v0  ;;  %893 = vmatpush3.msra.mxu1 %v429_v32  ;;  %v655_v32 = vld [vmem:[#allocation8 + $0xd0] sm:$0xff] }
 0x11f   :  { %894 = vmatprep.subr.mxu1 %v1038_v0 }
 0x120   :  { %895 = vmatpush3.msra.mxu1 %v428_v33  ;;  %v639_v33 = vld [vmem:[#allocation8 + $0x50] sm:$0xff] }
 0x121   :  { %896 = vmatprep.subr.mxu1 %v1038_v0 }
 0x122   :  { %897 = vmatpush3.msra.mxu1 %v427_v34  ;;  %v654_v34 = vld [vmem:[#allocation8 + $0xc8] sm:$0xff] }
 0x123   :  { %898 = vmatprep.subr.mxu1 %v1038_v0 }
 0x124   :  { %899 = vmatpush3.msra.mxu1 %v426_v35  ;;  %v638_v35 = vld [vmem:[#allocation8 + $0x48] sm:$0xff] }
 0x125   :  { %900 = vmatprep.subr.mxu1 %v1038_v0 }
 0x126   :  { %901 = vmatpush3.msra.mxu1 %v425_v36  ;;  %v653_v36 = vld [vmem:[#allocation8 + $0xc0] sm:$0xff] }
 0x127   :  { %902 = vmatprep.subr.mxu1 %v1038_v0 }
 0x128   :  { %903 = vmatpush3.msra.mxu1 %v424_v43  ;;  %v634_v43 = vld [vmem:[#allocation8 + $0x28] sm:$0xff] }
 0x129   :  { %904 = vmatprep.subr.mxu1 %v1038_v0 }
 0x12a   :  { %905 = vmatpush3.msra.mxu1 %v423_v44  ;;  %v649_v44 = vld [vmem:[#allocation8 + $0xa0] sm:$0xff] }
 0x12b   :  { %906 = vmatprep.subr.mxu1 %v1038_v0 }
 0x12c   :  { %907 = vmatpush3.msra.mxu1 %v422_v45  ;;  %v633_v45 = vld [vmem:[#allocation8 + $0x20] sm:$0xff] }
 0x12d   :  { %556 = vmatprep.subr.mxu1 %v543_v46  ;;  %v758_v46 = vld [vmem:[%s1273_s8] ss:$0 sm:$0xff] }
 0x1dd   :  { %v793_v37 = vpop.f32.mrf.mxu1 }
 0x1df   :  { %v794_v39 = vpop.f32.mrf.mxu1 }
 0x1e0   :  { %v795_v40 = vadd.f32 %v794_v39, %v793_v37  ;;  %v637_v37 = vld [vmem:[#allocation8 + $0x40] sm:$0xff]  ;;  %v636_v39 = vld [vmem:[#allocation8 + $0x38] sm:$0xff] }
 0x1e2   :  { %v324_v41 = vadd.f32 %v795_v40, %v756_v38  ;;  %v652_v38 = vld [vmem:[#allocation8 + $0xb8] sm:$0xff]  ;;  %v651_v40 = vld [vmem:[#allocation8 + $0xb0] sm:$0xff] }
 0x1e4   :  { %v327_v42 = vmax.f32 %v324_v41, 0.0  ;;  %v635_v41 = vld [vmem:[#allocation8 + $0x30] sm:$0xff] }
 0x1e6   :  { %890 = vmatmul.mubr.f32.vlgmr.msra.gmra.mxu0 %v327_v42  ;;  %v650_v42 = vld [vmem:[#allocation8 + $0xa8] sm:$0xff] }
 0x1e7   :  { %823 = vmatpush3.msra.mxu0 %v644_v23 }
 0x1e8   :  { %824 = vmatprep.subr.mxu0 %v659_v24 }
 0x1e9   :  { %825 = vmatpush3.msra.mxu0 %v643_v25 }
 0x1ea   :  { %826 = vmatprep.subr.mxu0 %v658_v26 }
 0x1eb   :  { %827 = vmatpush3.msra.mxu0 %v642_v27 }
 0x1ec   :  { %828 = vmatprep.subr.mxu0 %v657_v28 }
 0x1ed   :  { %829 = vmatpush3.msra.mxu0 %v641_v29 }
 0x1ee   :  { %830 = vmatprep.subr.mxu0 %v656_v30 }
 0x1ef   :  { %831 = vmatpush3.msra.mxu0 %v640_v31 }
 0x1f0   :  { %832 = vmatprep.subr.mxu0 %v655_v32 }
 0x1f1   :  { %833 = vmatpush3.msra.mxu0 %v639_v33 }
 0x1f2   :  { %834 = vmatprep.subr.mxu0 %v654_v34 }
 0x1f3   :  { %835 = vmatpush3.msra.mxu0 %v638_v35 }
 0x1f4   :  { %836 = vmatprep.subr.mxu0 %v653_v36 }
 0x1f5   :  { %837 = vmatpush3.msra.mxu0 %v637_v37 }
 0x1f6   :  { %838 = vmatprep.subr.mxu0 %v652_v38 }
 0x1f7   :  { %839 = vmatpush3.msra.mxu0 %v636_v39 }
 0x1f8   :  { %840 = vmatprep.subr.mxu0 %v651_v40 }
 0x1f9   :  { %841 = vmatpush3.msra.mxu0 %v635_v41 }
 0x1fa   :  { %842 = vmatprep.subr.mxu0 %v650_v42 }
 0x1fb   :  { %843 = vmatpush3.msra.mxu0 %v634_v43 }
 0x1fc   :  { %844 = vmatprep.subr.mxu0 %v649_v44 }
 0x1fd   :  { %845 = vmatpush3.msra.mxu0 %v633_v45 }
 0x2a6   :  { %v417_v48 = vpop.f32.mrf.mxu0 }
 0x2a7   :  { %v418_v49 = vadd.f32 %v757_v47, %v417_v48 }
 0x2a8   :  { %v891_v50 = vpop.f32.mrf.mxu0 }
 0x2a9   :  { %v421_v51 = vmax.f32 %v418_v49, 0.0 }
 0x2ab   :  { %909 = vmatmul.mubr.msk.f32.vlgmr.msra.gmra.mxu1 %vm437_vm1, %v421_v51  ;;  %v648_v51 = vld [vmem:[#allocation8 + $0x98] sm:$0xff] }
 0x2ac   :  { %557 = vmatpush1.msra.mxu1 %v542_v52  ;;  %620 = vmatprep.mubr.f32.mxu1 %v1038_v0  ;;  %v529_v0 = vld [vmem:[#allocation7 + $0x88] sm:$0xff]  ;;  %v632_v52 = vld [vmem:[#allocation8 + $0x18] sm:$0xff] }
 0x2ad   :  { %558 = vmatprep.subr.mxu1 %v541_v53  ;;  %846 = vmatprep.subr.mxu0 %v648_v51  ;;  %v647_v53 = vld [vmem:[#allocation8 + $0x90] sm:$0xff] }
 0x2ae   :  { %559 = vmatpush1.msra.mxu1 %v540_v54  ;;  %847 = vmatpush3.msra.mxu0 %v632_v52  ;;  %v631_v54 = vld [vmem:[#allocation8 + $0x10] sm:$0xff] }
 0x2af   :  { %560 = vmatprep.subr.mxu1 %v539_v55  ;;  %848 = vmatprep.subr.mxu0 %v647_v53  ;;  %v646_v55 = vld [vmem:[#allocation8 + $0x88] sm:$0xff] }
 0x2b0   :  { %561 = vmatpush1.msra.mxu1 %v538_v56  ;;  %849 = vmatpush3.msra.mxu0 %v631_v54  ;;  %v630_v56 = vld [vmem:[#allocation8 + $0x8] sm:$0xff] }
 0x2b1   :  { %562 = vmatprep.subr.mxu1 %v537_v57  ;;  %850 = vmatprep.subr.mxu0 %v646_v55  ;;  %v645_v57 = vld [vmem:[#allocation8 + $0x80] sm:$0xff] }
 0x2b2   :  { %563 = vmatpush1.msra.mxu1 %v536_v58  ;;  %851 = vmatpush3.msra.mxu0 %v630_v56  ;;  %v629_v58 = vld [vmem:[#allocation8] sm:$0xff] }
 0x2b3   :  { %564 = vmatprep.subr.mxu1 %v535_v59  ;;  %852 = vmatprep.subr.mxu0 %v645_v57  ;;  %v544_v59 = vld [vmem:[%s1275_s10] sm:$0x3]  ;;  %s1040_s10 = smov [#allocation10]  }
 0x2b4   :  { %565 = vmatpush1.msra.mxu1 %v534_v60  ;;  %853 = vmatpush3.msra.mxu0 %v629_v58  ;;  %v549_v60 = vrot.slane %v544_v59, %v137_v16  ;;  %s745_s21 = sshll.u32 %s1040_s10, 4  ;;  %s746_s21 = int_to_ptr.vmem [resolvable:$true] %s745_s21 }
 0x2b5   :  { %566 = vmatprep.subr.mxu1 %v533_v61  ;;  %v553_v61 = vrot.slane %v544_v59, %v141_v18  ;;  %s1002_s22 = scalar_lea.vmem %s746_s21, 128  ;;  %p1007_p7 = scmp.lt.s32.totalorder %s746_s21, %s746_s21 }
 0x2b6   :  { %567 = vmatpush1.msra.mxu1 %v532_v62  ;;  %p1003_p6 = scmp.ne.s32.totalorder %s746_s21, %s1002_s22  ;;  %p1008_p8 = scmp.lt.s32.totalorder %s1002_s22, %s1002_s22 }
 0x2b7   :  { %568 = vmatprep.subr.mxu1 %v531_v63 }
 0x2b8   :  { %569 = vmatpush1.msra.mxu1 %v530_v1  ;;  %p1009_p9 = por %p1008_p8, %p1007_p7 }
 0x2b9   :  { %570 = vmatprep.subr.mxu1 %v529_v0 }
 0x2ba   :  { %571 = vmatpush1.msra.mxu1 %v528_v2  ;;  %p1010_p10 = pnand %p1009_p9, %p1003_p6 }
 0x2bb   :  { %572 = vmatprep.subr.mxu1 %v527_v3 }
 0x2bc   :  { %573 = vmatpush1.msra.mxu1 %v526_v4 }
 0x2bd   :  { %574 = vmatprep.subr.mxu1 %v525_v5  ;;  %v760_v5 = vld [vmem:[%s1277_s12] ss:$0 sm:$0xff] }
 0x2be   :  { %575 = vmatpush1.msra.mxu1 %v524_v6 }
 0x2bf   :  { %576 = vmatprep.subr.mxu1 %v523_v7 }
 0x2c0   :  { %577 = vmatpush1.msra.mxu1 %v522_v8 }
 0x2c1   :  { %578 = vmatprep.subr.mxu1 %v521_v9 }
 0x2c2   :  { %579 = vmatpush1.msra.mxu1 %v520_v10 }
 0x2c3   :  { %580 = vmatprep.subr.mxu1 %v519_v11 }
 0x2c4   :  { %581 = vmatpush1.msra.mxu1 %v518_v12 }
 0x2c5   :  { %582 = vmatprep.subr.mxu1 %v517_v13 }
 0x2c6   :  { %583 = vmatpush1.msra.mxu1 %v516_v14 }
 0x2c7   :  { %584 = vmatprep.subr.mxu1 %v515_v17 }
 0x2c8   :  { %585 = vmatpush1.msra.mxu1 %v514_v19 }
 0x2c9   :  { %586 = vmatprep.subr.mxu1 %v513_v20 }
 0x2ca   :  { %587 = vmatpush1.msra.mxu1 %v512_v21 }
 0x36b   :  { %v507_v47 = vpop.f32.mrf.mxu1 }
 0x36c   :  { %v508_v48 = vadd.f32 %v758_v46, %v507_v47 }
 0x36d   :  { %v910_v49 = vpop.f32.mrf.mxu1 }
 0x36e   :  { %v511_v50 = vmax.f32 %v508_v48, 0.0 }
 0x370   :  { %621 = vmatmul.mubr.f32.vlgmr.msra.gmra.mxu1 %v511_v50 }
 0x430   :  { %v622_v62 = vpop.f32.mrf.mxu1 }
 0x431   :  { %v623_v63 = vadd.f32 %v622_v62, %v549_v60 }
 0x432   :  { %v624_v1 = vpop.f32.mrf.mxu1 }
 0x433   :  { %v625_v0 = vadd.f32 %v624_v1, %v553_v61  ;;  %v627_v3 = vmax.f32 %v623_v63, 0.0 }
 0x435   :  { %v628_v2 = vmax.f32 %v625_v0, 0.0 }
 0x437   :  { %732 = vmatprep.mubr.f32.mxu0 %v628_v2 }
 0x438   :  { %733 = vmatmul.mubr.f32.vlgmr.msra.gmra.mxu0 %v627_v3 }
 0x4f8   :  { %v854_v4 = vpop.f32.mrf.mxu0 }
 0x4fa   :  { %v855_v6 = vpop.f32.mrf.mxu0 }
 0x4fb   :  { %v856_v16 = vadd.f32 %v855_v6, %v854_v4 }
 0x4fd   :  { %v735_v7 = vadd.f32 %v856_v16, %v760_v5 }
 0x4ff   :  { %738 = vst [vmem:[#allocation10] sm:$0xff] %v735_v7 }
 0x500   :  { %1013 = shalt.err (!%p1010_p10)
}
 0x501   :  { %748 = dma.vmem_to_hbm [thread:$0]  %s746_s21, 128, %s1278_s13, [#allocation4]  }
 0x502   :  { %1028 = dma.done.wait [#allocation4], 128  }
 0x503   :  { %1029 = vsyncadd [#allocation4], 4294967168 }
 0x504   :  { %752 = vsyncpa [#allocation3], 1 }
 0x505   :  { %753 = vsyncpa [#allocation6], 1 }
 0x506   :  { %754 = vsyncpa [#allocation9], 1 }
 0x507   :  { %755 = vsyncpa [#allocation4], 1 }

</bundles_post_ra>
